<compile_context>
chip_gen: v5e
topology: v5e:2x2
jax: 0.10.0
libtpu: 0.0.40
codegen_flags: <defaults>
</compile_context>

<pallas_src>
import jax
import jax.numpy as jnp
import numpy as np
from jax.experimental import pallas as pl
from jax.experimental.pallas import tpu as pltpu

_LANE = 128


def _ffn_kernel(x_ref, w1_ref, b1_ref, w2_ref, b2_ref, o_ref):
    """x_ref/o_ref: (B_BLK, C, TP); w1: (4C, C); b1: (4C, 1); w2: (C, 4C); b2: (C, 1).

    Computes o[b] = W2 @ relu(W1 @ x[b] + b1) + b2 entirely in VMEM/vregs."""
    w1 = w1_ref[...]
    b1 = b1_ref[...]
    w2 = w2_ref[...]
    b2 = b2_ref[...]
    # Static unroll over the (small, <=8) batch block: each image is an
    # independent (C, TP) pixel slab -> clean 2-D MXU matmuls, no relayouts.
    # TODO(synk): at tiny C the MXU is badly under-filled; a VPU broadcast-FMA
    # path could replace layer 1, but the kernel is memory-bound so it is moot.
    for b in range(x_ref.shape[0]):
        x = x_ref[b]                                                    # (C, TP)
        h = jnp.dot(w1, x, preferred_element_type=jnp.float32)          # (4C, TP)
        h = jnp.maximum(h + b1, 0.0)                                     # bias + ReLU
        y = jnp.dot(w2, h, preferred_element_type=jnp.float32) + b2     # (C, TP)
        o_ref[b] = y.astype(o_ref.dtype)


def _largest_divisor_leq(n, cap):
    cap = int(max(1, min(n, cap)))
    for d in range(cap, 0, -1):
        if n % d == 0:
            return d
    return 1


def feed_forward_layer(x_nchw, w1, b1, w2, b2, *, block_target_bytes=2 * 1024 * 1024):
    """x_nchw: (N, C, H, W).  w1: (4C, C), b1: (4C,), w2: (C, 4C), b2: (C,)
    (PyTorch nn.Linear (out_features, in_features) layout, used as-is)."""
    N, C, H, W = x_nchw.shape
    C4 = w1.shape[0]
    assert w1.shape == (C4, C) and w2.shape == (C, C4)
    assert b1.shape == (C4,) and b2.shape == (C,)
    HW = H * W
    isz = x_nchw.dtype.itemsize
    per_image_bytes = C * HW * isz

    if per_image_bytes <= block_target_bytes:
        # Whole-image blocks: last block dim == full HW, so no 128-alignment
        # constraint and no padding.  Pack several images per step to reach the
        # byte target, but keep >= ~4 grid steps when N allows (megacore/v7x).
        tp = HW
        num_p = 1
        cap = block_target_bytes // per_image_bytes
        cap = min(cap, 8)                  # bound in-kernel static unroll
        cap = min(cap, max(1, N // 4))     # keep a few grid steps for 2 TCs
        b_blk = _largest_divisor_leq(N, cap)
    else:
        # Large images: 128-aligned pixel tiles sized to ~block_target bytes.
        # A ragged last tile is handled by Pallas's automatic boundary masking
        # (reads padded, OOB writes dropped) -> still zero pad/slice traffic.
        b_blk = 1
        tp = max(_LANE, (block_target_bytes // (C * isz)) // _LANE * _LANE)
        tp = min(tp, (HW + _LANE - 1) // _LANE * _LANE)
        num_p = pl.cdiv(HW, tp)

    x3 = x_nchw.reshape(N, C, HW)          # free reshape: no transpose, no copy
    grid = (N // b_blk, num_p)

    flops = 16 * N * HW * C * C            # 2*(4C*C + C*4C) MACs per pixel
    bytes_accessed = (2 * N * C * HW * isz
                      + (w1.size + w2.size + b1.size + b2.size) * isz)

    out = pl.pallas_call(
        _ffn_kernel,
        out_shape=jax.ShapeDtypeStruct((N, C, HW), x_nchw.dtype),
        grid=grid,
        in_specs=[
            pl.BlockSpec((b_blk, C, tp), lambda n, p: (n, 0, p)),   # x slab
            # Constant index_maps -> DMA'd once, VMEM-resident for all steps.
            pl.BlockSpec((C4, C), lambda n, p: (0, 0)),             # W1
            pl.BlockSpec((C4, 1), lambda n, p: (0, 0)),             # b1
            pl.BlockSpec((C, C4), lambda n, p: (0, 0)),             # W2
            pl.BlockSpec((C, 1), lambda n, p: (0, 0)),              # b2
        ],
        out_specs=pl.BlockSpec((b_blk, C, tp), lambda n, p: (n, 0, p)),
        compiler_params=pltpu.CompilerParams(
            dimension_semantics=("parallel", "parallel"),
            vmem_limit_bytes=32 * 1024 * 1024,
        ),
        cost_estimate=pl.CostEstimate(
            flops=flops, transcendentals=0, bytes_accessed=bytes_accessed),
    )(x3, w1, b1.reshape(C4, 1), w2, b2.reshape(C, 1))

    return out.reshape(N, C, H, W)


def init_feed_forward_params(in_features, key):
    """Deterministic init matching nn.Linear parameter shapes/bounds."""
    hidden = in_features * 4
    k1, k2, k3, k4 = jax.random.split(key, 4)
    bound1 = 1.0 / (in_features ** 0.5)
    bound2 = 1.0 / (hidden ** 0.5)
    w1 = jax.random.uniform(k1, (hidden, in_features), jnp.float32, -bound1, bound1)
    b1 = jax.random.uniform(k2, (hidden,), jnp.float32, -bound1, bound1)
    w2 = jax.random.uniform(k3, (in_features, hidden), jnp.float32, -bound2, bound2)
    b2 = jax.random.uniform(k4, (in_features,), jnp.float32, -bound2, bound2)
    return w1, b1, w2, b2


def _ref_forward(x, w1, b1, w2, b2):
    """Pure-JAX reference mirroring FeedForwardLayer.forward exactly."""
    N, C, H, W = x.shape
    out = jnp.transpose(x, (0, 2, 3, 1)).reshape(N * H * W, C)
    out = jnp.maximum(out @ w1.T + b1, 0.0)
    out = out @ w2.T + b2
    out = out.reshape(N, H, W, C)
    return jnp.transpose(out, (0, 3, 1, 2))


if __name__ == "__main__":
    key = jax.random.PRNGKey(0)
    kx, kp = jax.random.split(key)

    N, C, H, W = 2, 4, 16, 16          # in_features = 4
    x = jax.random.normal(kx, (N, C, H, W), jnp.float32)   # NCHW, as in PyTorch
    w1, b1, w2, b2 = init_feed_forward_params(C, kp)

    out = feed_forward_layer(x, w1, b1, w2, b2)
    out = jax.block_until_ready(out)

    ref = _ref_forward(x, w1, b1, w2, b2)
    assert out.shape == ref.shape == (N, C, H, W)
    np.testing.assert_allclose(np.asarray(out), np.asarray(ref),
                               rtol=1e-3, atol=1e-3)
    print("KERNEL_OK")
</pallas_src>

<mosaic_0001>
module attributes {stable_mosaic.version = 11 : i64} {
  func.func @_ffn_kernel(%arg0: i32, %arg1: i32, %arg2: memref<1x4x256xf32, #tpu.memory_space<vmem>>, %arg3: memref<16x4xf32, #tpu.memory_space<vmem>>, %arg4: memref<16x1xf32, #tpu.memory_space<vmem>>, %arg5: memref<4x16xf32, #tpu.memory_space<vmem>>, %arg6: memref<4x1xf32, #tpu.memory_space<vmem>>, %arg7: memref<1x4x256xf32, #tpu.memory_space<vmem>>) attributes {dimension_semantics = [#tpu.dimension_semantics<parallel>, #tpu.dimension_semantics<parallel>], iteration_bounds = array<i64: 2, 1>, scalar_prefetch = 0 : i64, scratch_operands = 0 : i64, tpu.core_type = #tpu.core_type<tc>, window_params = [{transform_indices = @transform_0, window_bounds = array<i64: 1, 4, 256>}, {pipeline_mode = #tpu.pipeline_mode<synchronous>, transform_indices = @transform_1, window_bounds = array<i64: 16, 4>}, {pipeline_mode = #tpu.pipeline_mode<synchronous>, transform_indices = @transform_2, window_bounds = array<i64: 16, 1>}, {pipeline_mode = #tpu.pipeline_mode<synchronous>, transform_indices = @transform_3, window_bounds = array<i64: 4, 16>}, {pipeline_mode = #tpu.pipeline_mode<synchronous>, transform_indices = @transform_4, window_bounds = array<i64: 4, 1>}, {transform_indices = @transform_5, window_bounds = array<i64: 1, 4, 256>}]} {
    %c0 = arith.constant 0 : index
    %c0_0 = arith.constant 0 : index
    %0 = vector.load %arg3[%c0, %c0_0] : memref<16x4xf32, #tpu.memory_space<vmem>>, vector<16x4xf32>
    %c0_1 = arith.constant 0 : index
    %c0_2 = arith.constant 0 : index
    %1 = vector.load %arg4[%c0_1, %c0_2] : memref<16x1xf32, #tpu.memory_space<vmem>>, vector<16x1xf32>
    %c0_3 = arith.constant 0 : index
    %c0_4 = arith.constant 0 : index
    %2 = vector.load %arg5[%c0_3, %c0_4] : memref<4x16xf32, #tpu.memory_space<vmem>>, vector<4x16xf32>
    %c0_5 = arith.constant 0 : index
    %c0_6 = arith.constant 0 : index
    %3 = vector.load %arg6[%c0_5, %c0_6] : memref<4x1xf32, #tpu.memory_space<vmem>>, vector<4x1xf32>
    %c0_7 = arith.constant 0 : index
    %c0_8 = arith.constant 0 : index
    %c0_9 = arith.constant 0 : index
    %4 = vector.load %arg2[%c0_7, %c0_8, %c0_9] : memref<1x4x256xf32, #tpu.memory_space<vmem>>, vector<1x4x256xf32>
    %5 = vector.shape_cast %4 : vector<1x4x256xf32> to vector<4x256xf32>
    %cst = arith.constant dense<0.000000e+00> : vector<16x256xf32>
    %6 = tpu.matmul %0, %5, %cst {dimension_numbers = #tpu.dot_dimension_numbers<[1], [0], [0], [1], [0, 0, 1, 1], [], []>} : vector<16x4xf32>, vector<4x256xf32>, vector<16x256xf32> -> vector<16x256xf32>
    %7 = vector.broadcast %1 : vector<16x1xf32> to vector<16x256xf32>
    %8 = arith.addf %6, %7 : vector<16x256xf32>
    %cst_10 = arith.constant 0.000000e+00 : f32
    %9 = vector.broadcast %cst_10 : f32 to vector<16x256xf32>
    %10 = arith.maximumf %8, %9 : vector<16x256xf32>
    %cst_11 = arith.constant dense<0.000000e+00> : vector<4x256xf32>
    %11 = tpu.matmul %2, %10, %cst_11 {dimension_numbers = #tpu.dot_dimension_numbers<[1], [0], [0], [1], [0, 0, 1, 1], [], []>} : vector<4x16xf32>, vector<16x256xf32>, vector<4x256xf32> -> vector<4x256xf32>
    %12 = vector.broadcast %3 : vector<4x1xf32> to vector<4x256xf32>
    %13 = arith.addf %11, %12 : vector<4x256xf32>
    %c0_12 = arith.constant 0 : index
    %c0_13 = arith.constant 0 : index
    %c0_14 = arith.constant 0 : index
    %14 = vector.load %arg7[%c0_12, %c0_13, %c0_14] : memref<1x4x256xf32, #tpu.memory_space<vmem>>, vector<1x4x256xf32>
    %15 = vector.shape_cast %14 : vector<1x4x256xf32> to vector<4x256xf32>
    %16 = vector.shape_cast %13 : vector<4x256xf32> to vector<1x4x256xf32>
    tpu.vector_store %arg7[%c0_12, %c0_13, %c0_14], %16 {strides = array<i32>} : memref<1x4x256xf32, #tpu.memory_space<vmem>>, vector<1x4x256xf32>,
    return
  }
  func.func @transform_0(%arg0: i32, %arg1: i32) -> (i32, i32, i32) {
    %c0_i32 = arith.constant 0 : i32
    %c0_i32_0 = arith.constant 0 : i32
    return %arg0, %c0_i32, %arg1 : i32, i32, i32
  }
  func.func @transform_1(%arg0: i32, %arg1: i32) -> (i32, i32) {
    %c0_i32 = arith.constant 0 : i32
    %c0_i32_0 = arith.constant 0 : i32
    %c0_i32_1 = arith.constant 0 : i32
    return %c0_i32, %c0_i32_0 : i32, i32
  }
  func.func @transform_2(%arg0: i32, %arg1: i32) -> (i32, i32) {
    %c0_i32 = arith.constant 0 : i32
    %c0_i32_0 = arith.constant 0 : i32
    %c0_i32_1 = arith.constant 0 : i32
    return %c0_i32, %c0_i32_0 : i32, i32
  }
  func.func @transform_3(%arg0: i32, %arg1: i32) -> (i32, i32) {
    %c0_i32 = arith.constant 0 : i32
    %c0_i32_0 = arith.constant 0 : i32
    %c0_i32_1 = arith.constant 0 : i32
    return %c0_i32, %c0_i32_0 : i32, i32
  }
  func.func @transform_4(%arg0: i32, %arg1: i32) -> (i32, i32) {
    %c0_i32 = arith.constant 0 : i32
    %c0_i32_0 = arith.constant 0 : i32
    %c0_i32_1 = arith.constant 0 : i32
    return %c0_i32, %c0_i32_0 : i32, i32
  }
  func.func @transform_5(%arg0: i32, %arg1: i32) -> (i32, i32, i32) {
    %c0_i32 = arith.constant 0 : i32
    %c0_i32_0 = arith.constant 0 : i32
    return %arg0, %c0_i32, %arg1 : i32, i32, i32
  }
}

</mosaic_0001>

<bundles_post_ra>
// kernel: tpu_custom_call.1
= control target key start
LH: loop header
LB: loop body
LE: loop exit
PB: predicated region body
PF: predicated region fallthrough
CT: control target
= control target key end

     0   :  { %10 = vsyncpa [#allocation3], 0  ;;  %s797_s0 = inlined_call_operand.vmem [shape: f32[2,4,256], index: 0, kind: input, shape index: {}]   ;;  %s798_s1 = inlined_call_operand.vmem [shape: f32[16,4], index: 1, kind: input, shape index: {}]   ;;  %s799_s2 = inlined_call_operand.vmem [shape: f32[16,1], index: 2, kind: input, shape index: {}]   ;;  %s800_s3 = inlined_call_operand.vmem [shape: f32[4,16], index: 3, kind: input, shape index: {}]   ;;  %s801_s4 = inlined_call_operand.vmem [shape: f32[4,1], index: 4, kind: input, shape index: {}]   ;;  %s802_s5 = inlined_call_operand.hbm [shape: f32[2,4,256], index: 5, kind: output, shape index: {}]  }
   0x1   :  { %12 = vsyncpa [#allocation3 + $0x1], 0  ;;  %s679_s18 = smov 0   ;;  %s681_s19 = smov 0  }
   0x2   :  { %s683_s20 = smov 0   ;;  %s685_s21 = smov 0  }
   0x3   :  { %s687_s22 = smov 0   ;;  %s689_s23 = smov 0  }
   0x4 LB: > { %s487_s24 = sadd.s32 4294967295, %s646_s23   ;;  %s488_s25 = sadd.s32 4294967294, %s646_s23   ;;  %s646_s23 = sphi %s689_s23, %s18_s23   ;;  %s642_s22 = sphi %s687_s22, %s809_s22   ;;  %s638_s21 = sphi %s685_s21, %s808_s21   ;;  %s634_s20 = sphi %s683_s20, %s807_s20   ;;  %s630_s19 = sphi %s681_s19, %s806_s19   ;;  %s626_s18 = sphi %s679_s18, %s805_s18  }
   0x5   : > { %s30_s26 = sadd.s32 1, %s642_s22  ;;  %s151_s27 = sadd.s32 1, %s634_s20 }
   0x6   : > { %p32_p0 = scmp.ge.s32.totalorder %s30_s26, 2  ;;  %p161_p1 = scmp.ne.s32.totalorder %s634_s20, %s630_s19 }
   0x7   : > { %p162_p2 = scmp.eq.s32.totalorder %s487_s24, 1  ;;  %p167_p3 = scmp.ne.s32.totalorder %s630_s19, %s626_s18 }
   0x8   : > { %s811_s26 = smov (%p32_p0, %s30_s26), 0  ;;  %p168_p5 = scmp.eq.s32.totalorder %s488_s25, 1 }
   0x9   : > { %p719_p4 = por %p162_p2, %p161_p1  ;;  %s146_s29 = ssub.s32 %s642_s22, %s811_s26 }
   0xa   : > { %p491_p6 = scmp.ge.s32.totalorder %s646_s23, 1  ;;  %p149_p7 = scmp.eq.s32.totalorder %s146_s29, 0 }
   0xb   : > { %p726_p8 = por %p168_p5, %p167_p3  ;;  %p211_p9 = scmp.lt.s32.totalorder %s646_s23, 3 }
   0xc   : > { %s732_s6 = scalar_select %p149_p7, %s634_s20, %s151_s27  }
   0xd   : > { %p212_p10 = pnand %p491_p6, %p211_p9 }
   0xe   : > { %p244_p11 = scmp.lt.s32.totalorder (!%p212_p10), %s638_s21, 1  ;;  %s509_s11 = sshll.u32 (!%p212_p10), %s638_s21, 3 }
   0xf   : > { %215 = sbr.rel (%p212_p10) target bundleno = 315 (0x13b), region = 40  ;;  %s406_s14 = scalar_lea.hbm (!%p212_p10), %s802_s5, %s509_s11 }
  0x10   : > { %s410_s17 = sshll.u32 (!%p212_p10), %s406_s14, 4  ;;  %s588_s7 = scalar_lea.hbm (!%p212_p10), %s802_s5, 16  ;;  %s411_s17 = int_to_ptr.hbm [resolvable:$true] %s410_s17 }
  0x11   : > { %s582_s24 = sshra.s32 (!%p212_p10), %s411_s17, 4  ;;  %s583_s24 = int_to_ptr.hbm [resolvable:$true] %s582_s24 }
  0x12   : > { %s584_s25 = scalar_lea.hbm (!%p212_p10), %s583_s24, 8  ;;  %p589_p1 = scmp.lt.s32.totalorder (!%p212_p10), %s583_s24, %s802_s5 }
  0x13   : > { %p585_p12 = scmp.ne.s32.totalorder (!%p212_p10), %s583_s24, %s584_s25  ;;  %p590_p2 = scmp.lt.s32.totalorder (!%p212_p10), %s588_s7, %s584_s25 }
  0x14   : > { %v257_v0 = vld [vmem:[%s799_s2 + $0x8] sm:$0xff]  ;;  %v648_v1 = vmov 0   ;;  %s245_s9 = scalar_select %p244_p11, %s638_s21, 1  ;;  %v256_v3 = vld [vmem:[%s799_s2] sm:$0xff]  ;;  %vm282_vm0 = vcmask 1043456   ;;  %vm275_vm1 = vcmask 31744  }
  0x15   : > { %566 = vset.pattern.permute.xlu0 %v648_v1  ;;  %567 = vset.pattern.permute.xlu1 %v648_v1  ;;  %v254_v4 = vld [vmem:[%s798_s1] sm:$0xff]  ;;  %v255_v7 = vld [vmem:[%s798_s1 + $0x8] sm:$0xff]  ;;  %vm342_vm2 = vcmask 130048   ;;  %p586_p13 = pnand %p585_p12, %p719_p4  ;;  %p591_p3 = por %p590_p2, %p589_p1 }
  0x16   : > { %268 = vperm.xlu0 %566, %v257_v0   ;;  %s508_s10 = sshll.u32 %s245_s9, 3  ;;  %v259_v8 = vld [vmem:[%s801_s4] sm:$0xf]  ;;  %s240_s9 = sand.u32 1, %s630_s19  }
  0x17   : > { %s251_s13 = scalar_lea.vmem %s797_s0, %s508_s10  ;;  %339 = vperm.xlu1 %567, %v259_v8   ;;  %v258_v23 = vld [vmem:[%s800_s3] sm:$0xf]  ;;  %s492_s10 = sshll.u32 %s240_s9, 3 }
  0x18   : > { %v260_v2 = vld [vmem:[%s251_s13] sm:$0xff]  ;;  %s242_s15 = scalar_lea.vmem [#allocation2], %s492_s10  ;;  %s393_s21 = scalar_lea.sflag [#allocation3], %s240_s9 }
  0x19   : > { %272 = vst [vmem:[#allocation1] ss:$2 sm:$0xff] %v260_v2  ;;  %s408_s16 = sshll.u32 %s242_s15, 4  ;;  %p587_p0 = pneg %p586_p13  ;;  %s409_s16 = int_to_ptr.vmem [resolvable:$true] %s408_s16 }
  0x1b   : > { %p592_p5 = pnand %p591_p3, %p587_p0 }
  0x1e   : > { %263 = vperm.xlu0 %566, %v256_v3  }
  0x20   : > { %v273_v5 = vld.sshfl [vmem:[#allocation1] sm:$0xff pattern:$0x75316420]  ;;  %v274_v6 = vld.sshfl [vmem:[#allocation1 + $0x8] sm:$0xff pattern:$0x75316420] }
  0x21   : > { %495 = vmatpush.msk.msra.mxu0 %vm282_vm0, %v273_v5  ;;  %498 = vmatpush.msk.msra.mxu1 %vm282_vm0, %v274_v6 }
  0x22   : > { %496 = vmatmul.msk.f32.vlgmr.msra.gmra.mxu0 %vm275_vm1, %v254_v4  ;;  %499 = vmatmul.msk.f32.vlgmr.msra.gmra.mxu1 %vm275_vm1, %v254_v4 }
  0x2a   : > { %497 = vmatmul.msk.f32.gmra.mxu0 %vm275_vm1, %v255_v7  ;;  %500 = vmatmul.msk.f32.gmra.mxu1 %vm275_vm1, %v255_v7 }
  0x88   : > { %v269_v9 = vpop.permute.xlu0 %268 }
  0x89   : > { %v340_v24 = vpop.permute.xlu1 %339 }
  0x90   : > { %v264_v12 = vpop.permute.xlu0 %263 }
  0x9f   : > { %v304_v10 = vpop.f32.mrf.mxu0  ;;  %v327_v11 = vpop.f32.mrf.mxu1 }
  0xa0   : > { %v305_v15 = vadd.f32 %v304_v10, %v264_v12  ;;  %v328_v16 = vadd.f32 %v327_v11, %v264_v12 }
  0xa2   : > { %v333_v21 = vmax.f32 %v305_v15, 0.0  ;;  %v334_v22 = vmax.f32 %v328_v16, 0.0 }
  0xa7   : > { %v307_v13 = vpop.f32.mrf.mxu0  ;;  %v330_v14 = vpop.f32.mrf.mxu1 }
  0xa8   : > { %v308_v17 = vadd.f32 %v307_v13, %v269_v9  ;;  %v331_v18 = vadd.f32 %v330_v14, %v269_v9 }
  0xaa   : > { %v335_v19 = vmax.f32 %v308_v17, 0.0  ;;  %v336_v20 = vmax.f32 %v331_v18, 0.0 }
  0xac   : > { %360 = vmatpush.msra.mxu2 %v335_v19  ;;  %380 = vmatpush.msra.mxu3 %v336_v20 }
  0xae   : > { %361 = vmatpush.msra.mxu2 %v333_v21  ;;  %381 = vmatpush.msra.mxu3 %v334_v22 }
  0xaf   : > { %501 = vmatmul.msk.f32.vlgmr.msra.gmra.mxu2 %vm342_vm2, %v258_v23  ;;  %502 = vmatmul.msk.f32.vlgmr.msra.gmra.mxu3 %vm342_vm2, %v258_v23 }
 0x132   : > { %v363_v25 = vpop.f32.mrf.mxu2  ;;  %v383_v26 = vpop.f32.mrf.mxu3 }
 0x133   : > { %v384_v27 = vadd.f32 %v383_v26, %v340_v24  ;;  %v364_v28 = vadd.f32 %v363_v25, %v340_v24 }
 0x135   : > { %v388_v29 = vrot.slane %v384_v27, 4 }
 0x137   : > { %v389_v30 = vsel %vm282_vm0, %v364_v28, %v388_v29 }
 0x138   : > { %391 = vst [vmem:[%s242_s15] sm:$0xff] %v389_v30 }
 0x139   : > { %595 = shalt.err (!%p592_p5)
}
 0x13a   : > { %510 = dma.vmem_to_hbm [thread:$0]  (%p719_p4), %s409_s16, 128, %s411_s17, %s393_s21  }
 0x13b PF: > { %p516_p6 = scmp.ge.s32.totalorder %s646_s23, 2  ;;  %s422_s9 = sand.u32 1, %s626_s18  }
 0x13c   : > { %s423_s11 = scalar_lea.sflag [#allocation3], %s422_s9 }
 0x13d   : > { %p513_p7 = pnand %p516_p6, %p726_p8 }
 0x13f   : > { %p514_p9 = pneg %p513_p7 }
 0x141   : > { %621 = dma.done.wait (%p514_p9), %s423_s11, 128  }
 0x142   : > { %623 = vsyncadd (%p514_p9), %s423_s11, 4294967168  ;;  %s18_s23 = sadd.s32 1, %s646_s23   ;;  %s805_s18 = smov %s630_s19 }
 0x143   : > { %p15_p10 = scmp.ge.s32.totalorder %s18_s23, 4   ;;  %s806_s19 = smov %s634_s20 }
 0x144   : > { %s807_s20 = smov %s732_s6  ;;  %s808_s21 = smov %s642_s22 }
 0x145   : > { %s809_s22 = smov %s811_s26  ;;  %17 = sbr.rel (!%p15_p10) target bundleno = 4 (0x4), region = 75 }
 0x14a   :  { %429 = vsyncpa [#allocation3], 1 }
 0x14b   :  { %431 = vsyncpa [#allocation3 + $0x1], 1 }

</bundles_post_ra>
